<compile_context>
chip_gen: v6e
topology: v6e:2x2x1
jax: 0.10.0
libtpu: 0.0.40
codegen_flags: <defaults>
</compile_context>

<pallas_src>
import functools
import math

import jax
import jax.numpy as jnp
from jax import lax
from jax.experimental import pallas as pl
from jax.experimental.pallas import tpu as pltpu


_GELU_C = math.sqrt(2.0 / math.pi)
_VMEM_LIMIT = 32 * 1024 * 1024   # raise v5e's 16 MiB scoped default; safe on all gens


def _tile(dim, cap):
    """Largest tile <= cap that evenly divides dim (full dim for small inputs)."""
    if dim <= cap:
        return dim
    t = cap
    while dim % t:
        t //= 2
    return t


# --------------------------- matmul + bias (+GELU) ---------------------------

def _matmul_bias_kernel(x_ref, w_ref, b_ref, o_ref, acc_ref, *, activation):
    k = pl.program_id(2)

    @pl.when(k == 0)
    def _():
        # Fold the bias into the accumulator init (no epilogue add).
        acc_ref[...] = jnp.broadcast_to(b_ref[...], acc_ref.shape)

    acc_ref[...] += jnp.dot(x_ref[...], w_ref[...],
                            preferred_element_type=jnp.float32)

    @pl.when(k == pl.num_programs(2) - 1)
    def _():
        y = acc_ref[...]
        if activation == "gelu":
            # OpenAI-GPT gelu: 0.5*x*(1+tanh(sqrt(2/pi)*(x+0.044715*x^3)))
            y = 0.5 * y * (1.0 + jnp.tanh(_GELU_C * (y + 0.044715 * (y ** 3))))
        o_ref[...] = y.astype(o_ref.dtype)


def matmul_bias(x, w, b, activation="none", out_dtype=jnp.bfloat16):
    M, K = x.shape
    N = w.shape[1]
    tm, tn, tk = _tile(M, 512), _tile(N, 512), _tile(K, 1024)
    kernel = functools.partial(_matmul_bias_kernel, activation=activation)
    return pl.pallas_call(
        kernel,
        out_shape=jax.ShapeDtypeStruct((M, N), out_dtype),
        grid=(M // tm, N // tn, K // tk),
        in_specs=[pl.BlockSpec((tm, tk), lambda i, j, k: (i, k)),
                  pl.BlockSpec((tk, tn), lambda i, j, k: (k, j)),
                  pl.BlockSpec((1, tn), lambda i, j, k: (0, j))],
        out_specs=pl.BlockSpec((tm, tn), lambda i, j, k: (i, j)),
        scratch_shapes=[pltpu.VMEM((tm, tn), jnp.float32)],
        compiler_params=pltpu.CompilerParams(
            dimension_semantics=("parallel", "parallel", "arbitrary"),
            vmem_limit_bytes=_VMEM_LIMIT),
    )(x.astype(jnp.bfloat16), w.astype(jnp.bfloat16),
      b.astype(jnp.float32).reshape(1, N))


# --------------------- flash-style causal self-attention ---------------------

def _flash_attn_kernel(q_ref, k_ref, v_ref, o_ref, m_sc, l_sc, acc_sc,
                       *, scale, tq, tk):
    qi = pl.program_id(1)
    ki = pl.program_id(2)

    @pl.when(ki == 0)
    def _():
        m_sc[...] = jnp.full_like(m_sc, -1e30)
        l_sc[...] = jnp.zeros_like(l_sc)
        acc_sc[...] = jnp.zeros_like(acc_sc)

    def flash_update(masked):
        q = q_ref[0]                               # (tq, dh) bf16
        kk = k_ref[0]                              # (tk, dh) bf16
        v = v_ref[0]                               # (tk, dh) bf16
        # scores in f32; scale applied as a multiply (no divide)
        s = lax.dot_general(q, kk, (((1,), (1,)), ((), ())),
                            preferred_element_type=jnp.float32) * scale
        if masked:
            # Only the diagonal block builds the mask (3 fewer VPU passes on
            # every strictly-below-diagonal block). Local indices suffice
            # because tq == tk and the block offsets are equal on the diagonal.
            row = lax.broadcasted_iota(jnp.int32, (tq, tk), 0)
            col = lax.broadcasted_iota(jnp.int32, (tq, tk), 1)
            s = jnp.where(col <= row, s, -1e9)     # same mask value as reference
        m_prev = m_sc[0]
        m_new = jnp.maximum(m_prev, jnp.max(s, axis=-1, keepdims=True))
        alpha = jnp.exp(m_prev - m_new)
        p = jnp.exp(s - m_new)
        l_sc[0] = alpha * l_sc[0] + jnp.sum(p, axis=-1, keepdims=True)
        acc_sc[0] = alpha * acc_sc[0] + jnp.dot(
            p.astype(v.dtype), v, preferred_element_type=jnp.float32)
        m_sc[0] = m_new

    @pl.when(ki < qi)           # strictly below the diagonal: no mask needed
    def _():
        flash_update(masked=False)

    @pl.when(ki == qi)          # diagonal block: apply causal mask
    def _():
        flash_update(masked=True)

    # ki > qi: fully masked -> no compute, and (via the clamped kv index_map)
    # no KV DMA either.

    @pl.when(ki == pl.num_programs(2) - 1)
    def _():
        o_ref[0] = (acc_sc[0] * pl.reciprocal(l_sc[0], approx=True)
                    ).astype(o_ref.dtype)


def causal_attention(q, k, v):
    BH, S, dh = q.shape
    tq = _tile(S, 256)
    tk = tq   # equal q/kv tiles keep the diagonal-block test & index clamp exact
    kernel = functools.partial(_flash_attn_kernel,
                               scale=1.0 / math.sqrt(dh), tq=tq, tk=tk)
    q_spec = pl.BlockSpec((1, tq, dh), lambda b, qi, ki: (b, qi, 0))
    # Clamp the kv block index to the query block: grid steps above the causal
    # diagonal re-use the previously fetched block, so no HBM traffic is spent
    # on fully-masked kv tiles.
    kv_spec = pl.BlockSpec((1, tk, dh),
                           lambda b, qi, ki: (b, jnp.minimum(ki, qi), 0))
    return pl.pallas_call(
        kernel,
        out_shape=jax.ShapeDtypeStruct((BH, S, dh), jnp.bfloat16),
        grid=(BH, S // tq, S // tk),
        in_specs=[q_spec, kv_spec, kv_spec],
        out_specs=q_spec,
        scratch_shapes=[pltpu.VMEM((1, tq, 1), jnp.float32),
                        pltpu.VMEM((1, tq, 1), jnp.float32),
                        pltpu.VMEM((1, tq, dh), jnp.float32)],
        compiler_params=pltpu.CompilerParams(
            dimension_semantics=("parallel", "parallel", "arbitrary")),
    )(q, k, v)


# ----------------------- fused residual-add + LayerNorm ----------------------

def _ln_residual_kernel(x_ref, r_ref, g_ref, b_ref, o_ref):
    x = x_ref[...].astype(jnp.float32) + r_ref[...].astype(jnp.float32)
    u = jnp.mean(x, axis=-1, keepdims=True)
    s = jnp.mean(jnp.square(x - u), axis=-1, keepdims=True)
    xn = (x - u) * lax.rsqrt(s + 1e-5)            # eps matches reference (1e-5)
    o_ref[...] = (g_ref[...] * xn + b_ref[...]).astype(o_ref.dtype)


def layernorm_residual(x, r, g, b, out_dtype=jnp.bfloat16):
    M, D = x.shape
    tm = _tile(M, 512)
    return pl.pallas_call(
        _ln_residual_kernel,
        out_shape=jax.ShapeDtypeStruct((M, D), out_dtype),
        grid=(M // tm,),
        in_specs=[pl.BlockSpec((tm, D), lambda i: (i, 0)),
                  pl.BlockSpec((tm, D), lambda i: (i, 0)),
                  pl.BlockSpec((1, D), lambda i: (0, 0)),
                  pl.BlockSpec((1, D), lambda i: (0, 0))],
        out_specs=pl.BlockSpec((tm, D), lambda i: (i, 0)),
        compiler_params=pltpu.CompilerParams(
            dimension_semantics=("parallel",)),
    )(x, r, g.reshape(1, D), b.reshape(1, D))


# -------------- tied LM head: V-tiled logits + streaming softmax -------------

def _lm_logits_stats_kernel(h_ref, e_ref, mask_ref, logits_ref, m_ref, l_ref,
                            acc_sc, m_sc, l_sc):
    vi = pl.program_id(1)
    ki = pl.program_id(2)
    last_v = pl.num_programs(1) - 1
    last_k = pl.num_programs(2) - 1

    @pl.when(jnp.logical_and(vi == 0, ki == 0))
    def _():
        m_sc[...] = jnp.full_like(m_sc, -1e30)
        l_sc[...] = jnp.zeros_like(l_sc)

    @pl.when(ki == 0)
    def _():
        acc_sc[...] = jnp.zeros_like(acc_sc)

    # logits tile = h @ embed^T, contracting on embed dim 1 (no embed.T in HBM).
    acc_sc[...] += lax.dot_general(h_ref[...], e_ref[...],
                                   (((1,), (1,)), ((), ())),
                                   preferred_element_type=jnp.float32)

    @pl.when(ki == last_k)
    def _():
        # Store logits in bf16 (halves the write + re-read of the (M,V) slab)
        # and compute the streaming max/sum-exp stats from the SAME
        # bf16-rounded values so the normalize pass is exactly consistent.
        logits_bf = (acc_sc[...] + mask_ref[...]).astype(jnp.bfloat16)
        logits_ref[...] = logits_bf
        lf = logits_bf.astype(jnp.float32)
        m_prev = m_sc[...]
        m_new = jnp.maximum(m_prev, jnp.max(lf, axis=-1, keepdims=True))
        l_sc[...] = (l_sc[...] * jnp.exp(m_prev - m_new)
                     + jnp.sum(jnp.exp(lf - m_new), axis=-1, keepdims=True))
        m_sc[...] = m_new

    @pl.when(jnp.logical_and(vi == last_v, ki == last_k))
    def _():
        m_ref[...] = m_sc[...]
        l_ref[...] = l_sc[...]


def _lm_softmax_kernel(logits_ref, m_ref, l_ref, probs_ref):
    # Exact divide: this pass is HBM-bound, the divide is free, and rows then
    # sum to 1 at f32 accuracy.
    p = jnp.exp(logits_ref[...].astype(jnp.float32) - m_ref[...])
    probs_ref[...] = p / l_ref[...]


def lm_head_softmax(h, embed, pos_emb_mask):
    M, D = h.shape
    V = embed.shape[0]
    # Pad awkward vocab sizes (e.g. 50257) up to a multiple of 512 so V tiles
    # stay 128-lane dense; padded columns carry a -1e30 mask -> probability 0.
    tv_cap = 512
    Vp = V if V <= tv_cap else ((V + tv_cap - 1) // tv_cap) * tv_cap
    embed_b = embed.astype(jnp.bfloat16)
    mask = pos_emb_mask.astype(jnp.float32)
    if Vp != V:
        embed_b = jnp.concatenate(
            [embed_b, jnp.zeros((Vp - V, D), jnp.bfloat16)], axis=0)
        mask = jnp.concatenate([mask, jnp.full((Vp - V,), -1e30, jnp.float32)])
    tm, tv, tk = _tile(M, 512), _tile(Vp, tv_cap), _tile(D, 512)

    logits, m_stat, l_stat = pl.pallas_call(
        _lm_logits_stats_kernel,
        out_shape=(jax.ShapeDtypeStruct((M, Vp), jnp.bfloat16),
                   jax.ShapeDtypeStruct((M, 1), jnp.float32),
                   jax.ShapeDtypeStruct((M, 1), jnp.float32)),
        grid=(M // tm, Vp // tv, D // tk),
        in_specs=[pl.BlockSpec((tm, tk), lambda i, j, k: (i, k)),
                  pl.BlockSpec((tv, tk), lambda i, j, k: (j, k)),
                  pl.BlockSpec((1, tv), lambda i, j, k: (0, j))],
        out_specs=(pl.BlockSpec((tm, tv), lambda i, j, k: (i, j)),
                   pl.BlockSpec((tm, 1), lambda i, j, k: (i, 0)),
                   pl.BlockSpec((tm, 1), lambda i, j, k: (i, 0))),
        scratch_shapes=[pltpu.VMEM((tm, tv), jnp.float32),
                        pltpu.VMEM((tm, 1), jnp.float32),
                        pltpu.VMEM((tm, 1), jnp.float32)],
        compiler_params=pltpu.CompilerParams(
            dimension_semantics=("parallel", "arbitrary", "arbitrary"),
            vmem_limit_bytes=_VMEM_LIMIT),
    )(h.astype(jnp.bfloat16), embed_b, mask.reshape(1, Vp))

    probs = pl.pallas_call(
        _lm_softmax_kernel,
        out_shape=jax.ShapeDtypeStruct((M, Vp), jnp.float32),
        grid=(M // tm, Vp // tv),
        in_specs=[pl.BlockSpec((tm, tv), lambda i, j: (i, j)),
                  pl.BlockSpec((tm, 1), lambda i, j: (i, 0)),
                  pl.BlockSpec((tm, 1), lambda i, j: (i, 0))],
        out_specs=pl.BlockSpec((tm, tv), lambda i, j: (i, j)),
        compiler_params=pltpu.CompilerParams(
            dimension_semantics=("parallel", "parallel"),
            vmem_limit_bytes=_VMEM_LIMIT),
    )(logits, m_stat, l_stat)
    if Vp != V:
        probs = probs[:, :V]
    return probs


# ------------------------- parameters & forward pass -------------------------

def init_params(key, vocab, n_embd, n_layer):
    keys = jax.random.split(key, 1 + n_layer)

    def w_init(k, shape):  # weights stored bf16 (MXU operands), biases/gains f32
        return (0.02 * jax.random.normal(k, shape, jnp.float32)).astype(jnp.bfloat16)

    params = {"embed": 0.02 * jax.random.normal(keys[0], (vocab, n_embd),
                                                jnp.float32)}
    layers = []
    for l in range(n_layer):
        k = jax.random.split(keys[1 + l], 4)
        layers.append(dict(
            w_attn=w_init(k[0], (n_embd, 3 * n_embd)),
            b_attn=jnp.zeros((3 * n_embd,), jnp.float32),
            w_proj=w_init(k[1], (n_embd, n_embd)),
            b_proj=jnp.zeros((n_embd,), jnp.float32),
            g1=jnp.ones((n_embd,), jnp.float32),
            b1=jnp.zeros((n_embd,), jnp.float32),
            w_fc=w_init(k[2], (n_embd, 4 * n_embd)),
            b_fc=jnp.zeros((4 * n_embd,), jnp.float32),
            w_mproj=w_init(k[3], (4 * n_embd, n_embd)),
            b_mproj=jnp.zeros((n_embd,), jnp.float32),
            g2=jnp.ones((n_embd,), jnp.float32),
            b2=jnp.zeros((n_embd,), jnp.float32),
        ))
    params["layers"] = layers
    return params


def custom_lm_forward(x_ids, params, n_head, n_ctx):
    """x_ids: (B, S, 2) int32 (token id, position id). Returns (B, S, vocab) probs."""
    embed = params["embed"]
    vocab, D = embed.shape
    B, S, _ = x_ids.shape
    dh = D // n_head

    # Embedding gather + sum over (token, position) slots — XLA glue.
    h = jnp.take(embed, x_ids, axis=0).sum(axis=2)           # (B, S, D) f32
    hf = h.reshape(B * S, D).astype(jnp.bfloat16)
    # TODO(synk): dropout layers (embd/attn/resid) are identity in eval mode.

    for lp in params["layers"]:
        qkv = matmul_bias(hf, lp["w_attn"], lp["b_attn"])    # (B*S, 3D) bf16
        qkv = qkv.reshape(B, S, 3, n_head, dh)
        # TODO(synk): head split/merge stays in XLA; a head-packed in-kernel
        # layout (lane-dense dh<128 stores without XLA transposes) would need
        # middle-dim relayouts that are not reliably expressible via BlockSpec.
        q, k, v = [qkv[:, :, i].transpose(0, 2, 1, 3).reshape(B * n_head, S, dh)
                   for i in range(3)]
        a = causal_attention(q, k, v)                        # (B*H, S, dh) bf16
        a = a.reshape(B, n_head, S, dh).transpose(0, 2, 1, 3).reshape(B * S, D)
        a = matmul_bias(a, lp["w_proj"], lp["b_proj"])
        n = layernorm_residual(hf, a, lp["g1"], lp["b1"])    # ln_1(x + attn)
        m = matmul_bias(n, lp["w_fc"], lp["b_fc"], activation="gelu")
        m = matmul_bias(m, lp["w_mproj"], lp["b_mproj"])
        hf = layernorm_residual(n, m, lp["g2"], lp["b2"])    # ln_2(n + mlp)

    # Tied LM head + pos_emb_mask + streaming softmax.
    pos_emb_mask = jnp.zeros((vocab,), jnp.float32).at[-n_ctx:].set(-1e12)
    probs = lm_head_softmax(hf, embed, pos_emb_mask)
    return probs.reshape(B, S, vocab)


# ----------------------------------- main ------------------------------------

if __name__ == "__main__":
    B, S = 2, 8
    n_ctx = 8
    n_bpe = 56
    vocab = n_bpe + n_ctx       # 64 (BPE tokens + position slots, like the ref)
    n_embd = 32
    n_head = 4
    n_layer = 2

    key = jax.random.PRNGKey(0)
    pkey, xkey = jax.random.split(key)
    params = init_params(pkey, vocab, n_embd, n_layer)

    tok_ids = jax.random.randint(xkey, (B, S), 0, n_bpe, dtype=jnp.int32)
    pos_ids = jnp.broadcast_to(n_bpe + jnp.arange(S, dtype=jnp.int32), (B, S))
    x = jnp.stack([tok_ids, pos_ids], axis=-1)               # (B, S, 2)

    probs = custom_lm_forward(x, params, n_head=n_head, n_ctx=n_ctx)
    probs = jax.block_until_ready(probs)

    assert probs.shape == (B, S, vocab)
    assert bool(jnp.all(jnp.isfinite(probs)))
    # softmax rows sum to ~1 (exact divide + stats consistent with bf16 logits)
    assert bool(jnp.allclose(probs.sum(-1), 1.0, atol=1e-2))
    print("KERNEL_OK")
</pallas_src>

<mosaic_0001>
module attributes {stable_mosaic.version = 11 : i64} {
  func.func @_matmul_bias_kernel(%arg0: i32, %arg1: i32, %arg2: i32, %arg3: memref<16x32xbf16, #tpu.memory_space<vmem>>, %arg4: memref<32x96xbf16, #tpu.memory_space<vmem>>, %arg5: memref<1x96xf32, #tpu.memory_space<vmem>>, %arg6: memref<16x96xbf16, #tpu.memory_space<vmem>>, %arg7: memref<16x96xf32, #tpu.memory_space<vmem>>) attributes {dimension_semantics = [#tpu.dimension_semantics<parallel>, #tpu.dimension_semantics<parallel>, #tpu.dimension_semantics<arbitrary>], iteration_bounds = array<i64: 1, 1, 1>, scalar_prefetch = 0 : i64, scratch_operands = 1 : i64, tpu.core_type = #tpu.core_type<tc>, window_params = [{transform_indices = @transform_0, window_bounds = array<i64: 16, 32>}, {transform_indices = @transform_1, window_bounds = array<i64: 32, 96>}, {transform_indices = @transform_2, window_bounds = array<i64: 1, 96>}, {transform_indices = @transform_3, window_bounds = array<i64: 16, 96>}]} {
    %c0_i32 = arith.constant 0 : i32
    %0 = arith.cmpi eq, %arg2, %c0_i32 : i32
    %1 = arith.extui %0 : i1 to i32
    %c0_i32_0 = arith.constant 0 : i32
    %2 = arith.cmpi ne, %1, %c0_i32_0 : i32
    scf.if %2 {
      %c0_10 = arith.constant 0 : index
      %c0_11 = arith.constant 0 : index
      %12 = vector.load %arg5[%c0_10, %c0_11] : memref<1x96xf32, #tpu.memory_space<vmem>>, vector<1x96xf32>
      %13 = vector.shape_cast %12 : vector<1x96xf32> to vector<1x96xf32>
      %14 = vector.broadcast %13 : vector<1x96xf32> to vector<16x96xf32>
      %c0_12 = arith.constant 0 : index
      %c0_13 = arith.constant 0 : index
      %15 = vector.load %arg7[%c0_12, %c0_13] : memref<16x96xf32, #tpu.memory_space<vmem>>, vector<16x96xf32>
      tpu.vector_store %arg7[%c0_12, %c0_13], %14 {strides = array<i32>} : memref<16x96xf32, #tpu.memory_space<vmem>>, vector<16x96xf32>,
    } else {
    }
    %c0 = arith.constant 0 : index
    %c0_1 = arith.constant 0 : index
    %3 = vector.load %arg7[%c0, %c0_1] : memref<16x96xf32, #tpu.memory_space<vmem>>, vector<16x96xf32>
    %c0_2 = arith.constant 0 : index
    %c0_3 = arith.constant 0 : index
    %4 = vector.load %arg3[%c0_2, %c0_3] : memref<16x32xbf16, #tpu.memory_space<vmem>>, vector<16x32xbf16>
    %c0_4 = arith.constant 0 : index
    %c0_5 = arith.constant 0 : index
    %5 = vector.load %arg4[%c0_4, %c0_5] : memref<32x96xbf16, #tpu.memory_space<vmem>>, vector<32x96xbf16>
    %cst = arith.constant dense<0.000000e+00> : vector<16x96xf32>
    %6 = tpu.matmul %4, %5, %cst {dimension_numbers = #tpu.dot_dimension_numbers<[1], [0], [0], [1], [0, 0, 1, 1], [], []>} : vector<16x32xbf16>, vector<32x96xbf16>, vector<16x96xf32> -> vector<16x96xf32>
    %7 = arith.addf %3, %6 : vector<16x96xf32>
    %c0_6 = arith.constant 0 : index
    %c0_7 = arith.constant 0 : index
    %8 = vector.load %arg7[%c0_6, %c0_7] : memref<16x96xf32, #tpu.memory_space<vmem>>, vector<16x96xf32>
    tpu.vector_store %arg7[%c0_6, %c0_7], %7 {strides = array<i32>} : memref<16x96xf32, #tpu.memory_space<vmem>>, vector<16x96xf32>,
    %c0_i32_8 = arith.constant 0 : i32
    %9 = arith.cmpi eq, %arg2, %c0_i32_8 : i32
    %10 = arith.extui %9 : i1 to i32
    %c0_i32_9 = arith.constant 0 : i32
    %11 = arith.cmpi ne, %10, %c0_i32_9 : i32
    scf.if %11 {
      %c0_10 = arith.constant 0 : index
      %c0_11 = arith.constant 0 : index
      %12 = vector.load %arg7[%c0_10, %c0_11] : memref<16x96xf32, #tpu.memory_space<vmem>>, vector<16x96xf32>
      %13 = arith.truncf %12 : vector<16x96xf32> to vector<16x96xbf16>
      %c0_12 = arith.constant 0 : index
      %c0_13 = arith.constant 0 : index
      %14 = vector.load %arg6[%c0_12, %c0_13] : memref<16x96xbf16, #tpu.memory_space<vmem>>, vector<16x96xbf16>
      tpu.vector_store %arg6[%c0_12, %c0_13], %13 {strides = array<i32>} : memref<16x96xbf16, #tpu.memory_space<vmem>>, vector<16x96xbf16>,
    } else {
    }
    return
  }
  func.func @transform_0(%arg0: i32, %arg1: i32, %arg2: i32) -> (i32, i32) {
    %c0_i32 = arith.constant 0 : i32
    return %arg0, %arg2 : i32, i32
  }
  func.func @transform_1(%arg0: i32, %arg1: i32, %arg2: i32) -> (i32, i32) {
    %c0_i32 = arith.constant 0 : i32
    return %arg2, %arg1 : i32, i32
  }
  func.func @transform_2(%arg0: i32, %arg1: i32, %arg2: i32) -> (i32, i32) {
    %c0_i32 = arith.constant 0 : i32
    %c0_i32_0 = arith.constant 0 : i32
    return %c0_i32, %arg1 : i32, i32
  }
  func.func @transform_3(%arg0: i32, %arg1: i32, %arg2: i32) -> (i32, i32) {
    %c0_i32 = arith.constant 0 : i32
    return %arg0, %arg1 : i32, i32
  }
}

</mosaic_0001>

<bundles_post_ra>
// kernel: tpu_custom_call.1
= control target key start
LH: loop header
LB: loop body
LE: loop exit
PB: predicated region body
PF: predicated region fallthrough
CT: control target
= control target key end

     0   :  { %8 = vsyncpa [#allocation4], 0  ;;  %s315_s0 = inlined_call_operand.hbm [shape: bf16[16,32], index: 0, kind: input, shape index: {}]   ;;  %s316_s1 = inlined_call_operand.hbm [shape: bf16[32,96], index: 1, kind: input, shape index: {}]   ;;  %s317_s2 = inlined_call_operand.vmem [shape: f32[1,96], index: 2, kind: input, shape index: {}]   ;;  %s318_s3 = inlined_call_operand.hbm [shape: bf16[16,96], index: 3, kind: output, shape index: {}]  }
   0x1   :  { %9 = vsyncpa [#allocation7], 0 }
   0x2   :  { %10 = vsyncpa [#allocation5], 0  ;;  %s263_s12 = smov [#allocation3]  }
   0x3   :  { %s16_s13 = sshll.u32 %s263_s12, 4  ;;  %s17_s13 = int_to_ptr.vmem [resolvable:$true] %s16_s13 }
   0x4   :  { %s205_s14 = scalar_lea.vmem %s17_s13, 128  ;;  %p210_p1 = scmp.lt.s32.totalorder %s17_s13, %s17_s13 }
   0x5   :  { %p206_p0 = scmp.ne.s32.totalorder %s17_s13, %s205_s14  ;;  %p211_p2 = scmp.lt.s32.totalorder %s205_s14, %s205_s14 }
   0x7   :  { %p212_p3 = por %p211_p2, %p210_p1 }
   0x9   :  { %p213_p4 = pnand %p212_p3, %p206_p0 }
   0xb   :  { %216 = shalt.err (!%p213_p4)
}
   0xc   :  { %s264_s15 = smov 64   ;;  %s265_s16 = smov 4  }
   0xd   :  { %22 = dma.hbm_to_vmem [thread:$0]  %s315_s0, 128, %s17_s13, [#allocation4], %s264_s15, %s264_s15, %s265_s16  }
   0xe   :  { %s266_s19 = smov [#allocation6]  }
   0xf   :  { %s28_s20 = sshll.u32 %s266_s19, 4  ;;  %s29_s20 = int_to_ptr.vmem [resolvable:$true] %s28_s20 }
  0x10   :  { %s225_s21 = scalar_lea.vmem %s29_s20, 256  ;;  %p230_p6 = scmp.lt.s32.totalorder %s29_s20, %s29_s20 }
  0x11   :  { %p226_p5 = scmp.ne.s32.totalorder %s29_s20, %s225_s21  ;;  %p231_p7 = scmp.lt.s32.totalorder %s225_s21, %s225_s21 }
  0x13   :  { %p232_p8 = por %p231_p7, %p230_p6 }
  0x15   :  { %p233_p9 = pnand %p232_p8, %p226_p5 }
  0x17   :  { %236 = shalt.err (!%p233_p9)
}
  0x18   :  { %34 = dma.hbm_to_vmem [thread:$0]  %s316_s1, 256, %s29_s20, [#allocation7], %s264_s15, %s264_s15, %s265_s16  }
  0x19   :  { %257 = dma.done.wait [#allocation4], 128  }
  0x1a   :  { %258 = vsyncadd [#allocation4], 4294967168 }
  0x1b   :  { %259 = dma.done.wait [#allocation7], 256  }
  0x1c   :  { %260 = vsyncadd [#allocation7], 4294967040  ;;  %v267_v0 = vmov 0.0   ;;  %vm268_vm0 = vmmov 0   ;;  %v194_v1 = vld [vmem:[#allocation6 + $0x8] sm:$0xff]   ;;  %vm55_vm1 = vcmask 785408  }
  0x1d   :  { %179 = vmatprep.subr.bf16.mxu0 %v267_v0  ;;  %183 = vmatprep.mubr.msk.bf16.mxu0 %vm268_vm0, %v267_v0  ;;  %v195_v2 = vld [vmem:[#allocation6] sm:$0xff]   ;;  %v167_v3 = vld [vmem:[%s317_s2] ss:$0 sm:$0xff]  ;;  %v196_v4 = vld [vmem:[#allocation3] sm:$0xff]   ;;  %vm83_vm2 = vcmask 261120   ;;  %vm146_vm3 = vcmask 781312  }
  0x1e   :  { %180 = vmatpush3.bf16.msra.mxu0 %v194_v1  ;;  %56 = vst.msk [vmem:[#allocation2] sm:$0xff] %vm55_vm1, %v167_v3  ;;  %57 = vst.msk [vmem:[#allocation2 + $0x8] sm:$0xff] %vm55_vm1, %v167_v3  ;;  %s269_s1 = smov [#allocation8]  }
  0x1f   :  { %181 = vmatprep.subr.bf16.mxu0 %v267_v0  ;;  %s154_s2 = sshll.u32 %s269_s1, 4  ;;  %s155_s2 = int_to_ptr.vmem [resolvable:$true] %s154_s2 }
  0x20   :  { %s237_s25 = scalar_lea.vmem %s155_s2, 128  ;;  %p242_p11 = scmp.lt.s32.totalorder %s155_s2, %s155_s2 }
  0x21   :  { %p238_p10 = scmp.ne.s32.totalorder %s155_s2, %s237_s25  ;;  %p243_p12 = scmp.lt.s32.totalorder %s237_s25, %s237_s25 }
  0x22   :  { %182 = vmatpush3.bf16.msra.mxu0 %v195_v2 }
  0x23   :  { %p244_p13 = por %p243_p12, %p242_p11 }
  0x25   :  { %184 = vmatmul.mubr.msk.bf16.vlgmr.msra.gmra.mxu0 %vm83_vm2, %v196_v4  ;;  %v58_v5 = vld [vmem:[#allocation2] sm:$0xff]  ;;  %v59_v9 = vld [vmem:[#allocation2 + $0x8] sm:$0xff]  ;;  %p245_p0 = pnand %p244_p13, %p238_p10 }
  0xe5   :  { %v121_v6 = vpop.f32.mrf.mxu0 }
  0xe6   :  { %v128_v7 = vadd.f32 %v121_v6, %v58_v5 }
  0xe7   :  { %v185_v8 = vpop.f32.mrf.mxu0 }
  0xe8   :  { %131 = vst.msk [vmem:[#allocation2] sm:$0xff] %vm55_vm1, %v128_v7 }
  0xe9   :  { %v124_v10 = vpop.f32.mrf.mxu0 }
  0xea   :  { %v129_v11 = vadd.f32 %v124_v10, %v59_v9 }
  0xeb   :  { %v186_v12 = vpop.f32.mrf.mxu0 }
  0xec   :  { %132 = vst.msk [vmem:[#allocation2 + $0x8] sm:$0xff] %vm55_vm1, %v129_v11 }
  0xef   :  { %v136_v13 = vld [vmem:[#allocation2] sm:$0xff] }
  0xf0   :  { %v174_v14 = vpack.c.bf16 %v136_v13, %v136_v13 }
  0xf2   :  { %147 = vst.msk [vmem:[#allocation8] sm:$0xf] %vm146_vm3, %v174_v14 }
  0xf3   :  { %v137_v15 = vld [vmem:[#allocation2 + $0x8] sm:$0xff] }
  0xf4   :  { %v175_v16 = vpack.c.bf16 %v137_v15, %v137_v15 }
  0xf6   :  { %148 = vst.msk [vmem:[#allocation8 + $0x4] sm:$0xf] %vm146_vm3, %v175_v16 }
  0xf7   :  { %248 = shalt.err (!%p245_p0)
}
  0xf8   :  { %160 = dma.vmem_to_hbm [thread:$0]  %s155_s2, 128, %s318_s3, [#allocation5], %s264_s15, %s264_s15, %s265_s16  }
  0xf9   :  { %261 = dma.done.wait [#allocation5], 128  }
  0xfa   :  { %262 = vsyncadd [#allocation5], 4294967168 }
  0xfb   :  { %164 = vsyncpa [#allocation4], 1 }
  0xfc   :  { %165 = vsyncpa [#allocation7], 1 }
  0xfd   :  { %166 = vsyncpa [#allocation5], 1 }

</bundles_post_ra>
